<compile_context>
chip_gen: v6e
topology: v6e:2x2x1
jax: 0.10.0
libtpu: 0.0.40
codegen_flags: <defaults>
</compile_context>

<pallas_src>
import jax
import jax.numpy as jnp
from jax import lax
from jax.experimental import pallas as pl
from jax.experimental.pallas import tpu as pltpu


def _round_up(a: int, b: int) -> int:
    return (a + b - 1) // b * b


def _ard_kernel(lbw_ref, x_ref, y_ref, o_ref):
    """One (TN, TM) output tile: K = exp(-0.5 * weighted_sq_dist).

    lbw_ref : (1, D)   log band width (parameter)
    x_ref   : (TN, D)  row block of x
    y_ref   : (TM, D)  row block of y
    o_ref   : (TN, TM) output tile
    """
    lbw = lbw_ref[...].astype(jnp.float32)                  # (1, D)
    inv_bw = jnp.exp(-lbw)                                  # 1 / exp(lbw), (1, D)

    x = x_ref[...]                                          # (TN, D) native dtype
    y = y_ref[...]                                          # (TM, D) native dtype
    xf = x.astype(jnp.float32)
    yf = y.astype(jnp.float32)

    # Cross term on the MXU: fold inv_bw into the x operand, keep operands in
    # the input dtype (bf16 stays bf16), contract over D without forming y.T.
    xw = (xf * inv_bw).astype(x.dtype)                      # (TN, D)
    cross = lax.dot_general(
        xw, y,
        dimension_numbers=(((1,), (1,)), ((), ())),
        preferred_element_type=jnp.float32)                 # (TN, TM)

    # Norm terms in f32 for accuracy. sq_y is produced directly in lane-major
    # (1, TM) layout (contraction over D), avoiding an XLU transpose per tile.
    sq_x = jnp.sum(xf * xf * inv_bw, axis=1, keepdims=True)  # (TN, 1)
    sq_y = lax.dot_general(
        inv_bw, yf * yf,
        dimension_numbers=(((1,), (1,)), ((), ())),
        preferred_element_type=jnp.float32)                 # (1, TM)

    pdist = sq_x + sq_y - 2.0 * cross
    pdist = jnp.maximum(pdist, 0.0)                         # clamp cancellation noise
    o_ref[...] = jnp.exp(-0.5 * pdist).astype(o_ref.dtype)


def ard_forward(x, log_band_width, y=None, *, tn_max: int = 256, tm_max: int = 512):
    """ARD kernel matrix K[n, m] = exp(-0.5 * sum_d (x[n,d]-y[m,d])^2 / exp(lbw[d]))."""
    if y is None:
        y = x
    N, D = x.shape
    M, Dy = y.shape
    assert D == Dy == log_band_width.shape[-1]

    out_dtype = jnp.float32  # keep f32 exp/output; bf16 is an opt-in precision tradeoff

    # Tile sizes: TN multiple of 8 (sublanes), TM multiple of 128 (lane-dense stores).
    tn = min(tn_max, _round_up(N, 8))
    tm = min(tm_max, _round_up(M, 128))
    Np = _round_up(N, tn)
    Mp = _round_up(M, tm)

    xp = x if Np == N else jnp.pad(x, ((0, Np - N), (0, 0)))
    yp = y if Mp == M else jnp.pad(y, ((0, Mp - M), (0, 0)))
    lbw2d = log_band_width.reshape(1, D).astype(jnp.float32)

    grid = (Np // tn, Mp // tm)

    itemsize = jnp.dtype(x.dtype).itemsize
    cost = pl.CostEstimate(
        flops=2 * Np * Mp * D + 4 * Np * Mp,
        transcendentals=Np * Mp,
        bytes_accessed=(Np * D + Mp * D) * itemsize + Np * Mp * 4,
    )

    # Double-buffered x/y/out tiles + the (1, D) parameter; leave headroom and
    # clamp to v7x's 64 MiB physical VMEM.
    vmem_need = 4 * (2 * (tn * D + tm * D + tn * tm) + 2 * D)
    vmem_limit = int(min(max(vmem_need + (4 << 20), 32 << 20), 64 << 20))

    out = pl.pallas_call(
        _ard_kernel,
        out_shape=jax.ShapeDtypeStruct((Np, Mp), out_dtype),
        grid_spec=pltpu.PrefetchScalarGridSpec(
            num_scalar_prefetch=0,
            grid=grid,
            in_specs=[
                pl.BlockSpec((1, D), lambda i, j: (0, 0)),    # log_band_width
                pl.BlockSpec((tn, D), lambda i, j: (i, 0)),   # x row tile
                pl.BlockSpec((tm, D), lambda i, j: (j, 0)),   # y row tile
            ],
            out_specs=pl.BlockSpec((tn, tm), lambda i, j: (i, j)),
        ),
        compiler_params=pltpu.CompilerParams(
            dimension_semantics=("parallel", "parallel"),
            vmem_limit_bytes=vmem_limit,
        ),
        cost_estimate=cost,
    )(lbw2d, xp, yp)

    return out[:N, :M]


def ard_reference(x, log_band_width, y=None):
    """Pure-JAX reference for verification."""
    if y is None:
        y = x
    bw = jnp.exp(log_band_width)                    # (D,)
    diff = x[:, None, :] - y[None, :, :]            # (N, M, D)
    pdist = jnp.sum(diff * diff / bw, axis=-1)      # (N, M)
    return jnp.exp(-0.5 * pdist)


if __name__ == "__main__":
    key = jax.random.PRNGKey(0)
    k_param, k_x, k_y = jax.random.split(key, 3)

    feature_len = 32
    N = 16
    M = 24

    # Deterministic parameter init: nn.init.normal_(log_band_width)
    log_band_width = jax.random.normal(k_param, (feature_len,), dtype=jnp.float32)
    x = jax.random.normal(k_x, (N, feature_len), dtype=jnp.float32)
    y = jax.random.normal(k_y, (M, feature_len), dtype=jnp.float32)

    # Self-kernel path (y=None -> y=x)
    out_self = jax.block_until_ready(ard_forward(x, log_band_width))
    ref_self = ard_reference(x, log_band_width)
    assert out_self.shape == (N, N)
    assert jnp.max(jnp.abs(out_self - ref_self)) < 1e-4, "self-kernel mismatch vs reference"

    # Cross-kernel path (explicit y)
    out_xy = jax.block_until_ready(ard_forward(x, log_band_width, y))
    ref_xy = ard_reference(x, log_band_width, y)
    assert out_xy.shape == (N, M)
    assert jnp.max(jnp.abs(out_xy - ref_xy)) < 1e-4, "cross-kernel mismatch vs reference"

    print("KERNEL_OK")
</pallas_src>

<mosaic_0001>
module attributes {stable_mosaic.version = 11 : i64} {
  func.func @_ard_kernel(%arg0: i32, %arg1: i32, %arg2: memref<1x32xf32, #tpu.memory_space<vmem>>, %arg3: memref<16x32xf32, #tpu.memory_space<vmem>>, %arg4: memref<128x32xf32, #tpu.memory_space<vmem>>, %arg5: memref<16x128xf32, #tpu.memory_space<vmem>>) attributes {dimension_semantics = [#tpu.dimension_semantics<parallel>, #tpu.dimension_semantics<parallel>], iteration_bounds = array<i64: 1, 1>, scalar_prefetch = 0 : i64, scratch_operands = 0 : i64, tpu.core_type = #tpu.core_type<tc>, window_params = [{pipeline_mode = #tpu.pipeline_mode<synchronous>, transform_indices = @transform_0, window_bounds = array<i64: 1, 32>}, {transform_indices = @transform_1, window_bounds = array<i64: 16, 32>}, {transform_indices = @transform_2, window_bounds = array<i64: 128, 32>}, {transform_indices = @transform_3, window_bounds = array<i64: 16, 128>}]} {
    %c0 = arith.constant 0 : index
    %c0_0 = arith.constant 0 : index
    %0 = vector.load %arg2[%c0, %c0_0] : memref<1x32xf32, #tpu.memory_space<vmem>>, vector<1x32xf32>
    %cst = arith.constant 0.000000e+00 : f32
    %1 = vector.broadcast %cst : f32 to vector<1x32xf32>
    %2 = arith.subf %1, %0 : vector<1x32xf32>
    %3 = math.exp %2 : vector<1x32xf32>
    %c0_1 = arith.constant 0 : index
    %c0_2 = arith.constant 0 : index
    %4 = vector.load %arg3[%c0_1, %c0_2] : memref<16x32xf32, #tpu.memory_space<vmem>>, vector<16x32xf32>
    %c0_3 = arith.constant 0 : index
    %c0_4 = arith.constant 0 : index
    %5 = vector.load %arg4[%c0_3, %c0_4] : memref<128x32xf32, #tpu.memory_space<vmem>>, vector<128x32xf32>
    %6 = vector.broadcast %3 : vector<1x32xf32> to vector<16x32xf32>
    %7 = arith.mulf %4, %6 : vector<16x32xf32>
    %cst_5 = arith.constant dense<0.000000e+00> : vector<16x128xf32>
    %8 = tpu.matmul %7, %5, %cst_5 {dimension_numbers = #tpu.dot_dimension_numbers<[1], [1], [0], [0], [0, 0, 1, 0], [], []>} : vector<16x32xf32>, vector<128x32xf32>, vector<16x128xf32> -> vector<16x128xf32>
    %9 = arith.mulf %4, %4 : vector<16x32xf32>
    %10 = vector.broadcast %3 : vector<1x32xf32> to vector<16x32xf32>
    %11 = arith.mulf %9, %10 : vector<16x32xf32>
    %cst_6 = arith.constant dense<0.000000e+00> : vector<16xf32>
    %12 = vector.multi_reduction <add>, %11, %cst_6 [1] : vector<16x32xf32> to vector<16xf32>
    %13 = vector.shape_cast %12 : vector<16xf32> to vector<16x1xf32>
    %14 = arith.mulf %5, %5 : vector<128x32xf32>
    %cst_7 = arith.constant dense<0.000000e+00> : vector<1x128xf32>
    %15 = tpu.matmul %3, %14, %cst_7 {dimension_numbers = #tpu.dot_dimension_numbers<[1], [1], [0], [0], [0, 0, 1, 0], [], []>} : vector<1x32xf32>, vector<128x32xf32>, vector<1x128xf32> -> vector<1x128xf32>
    %16 = vector.broadcast %13 : vector<16x1xf32> to vector<16x128xf32>
    %17 = vector.broadcast %15 : vector<1x128xf32> to vector<16x128xf32>
    %18 = arith.addf %16, %17 : vector<16x128xf32>
    %cst_8 = arith.constant 2.000000e+00 : f32
    %19 = vector.broadcast %cst_8 : f32 to vector<16x128xf32>
    %20 = arith.mulf %19, %8 : vector<16x128xf32>
    %21 = arith.subf %18, %20 : vector<16x128xf32>
    %cst_9 = arith.constant 0.000000e+00 : f32
    %22 = vector.broadcast %cst_9 : f32 to vector<16x128xf32>
    %23 = arith.maximumf %21, %22 : vector<16x128xf32>
    %cst_10 = arith.constant -5.000000e-01 : f32
    %24 = vector.broadcast %cst_10 : f32 to vector<16x128xf32>
    %25 = arith.mulf %24, %23 : vector<16x128xf32>
    %26 = math.exp %25 : vector<16x128xf32>
    %c0_11 = arith.constant 0 : index
    %c0_12 = arith.constant 0 : index
    %27 = vector.load %arg5[%c0_11, %c0_12] : memref<16x128xf32, #tpu.memory_space<vmem>>, vector<16x128xf32>
    tpu.vector_store %arg5[%c0_11, %c0_12], %26 {strides = array<i32>} : memref<16x128xf32, #tpu.memory_space<vmem>>, vector<16x128xf32>,
    return
  }
  func.func @transform_0(%arg0: i32, %arg1: i32) -> (i32, i32) {
    %c0_i32 = arith.constant 0 : i32
    %c0_i32_0 = arith.constant 0 : i32
    %c0_i32_1 = arith.constant 0 : i32
    return %c0_i32, %c0_i32_0 : i32, i32
  }
  func.func @transform_1(%arg0: i32, %arg1: i32) -> (i32, i32) {
    %c0_i32 = arith.constant 0 : i32
    %c0_i32_0 = arith.constant 0 : i32
    return %arg0, %c0_i32 : i32, i32
  }
  func.func @transform_2(%arg0: i32, %arg1: i32) -> (i32, i32) {
    %c0_i32 = arith.constant 0 : i32
    %c0_i32_0 = arith.constant 0 : i32
    return %arg1, %c0_i32 : i32, i32
  }
  func.func @transform_3(%arg0: i32, %arg1: i32) -> (i32, i32) {
    %c0_i32 = arith.constant 0 : i32
    return %arg0, %arg1 : i32, i32
  }
}

</mosaic_0001>

<bundles_post_ra>
// kernel: tpu_custom_call.1
= control target key start
LH: loop header
LB: loop body
LE: loop exit
PB: predicated region body
PF: predicated region fallthrough
CT: control target
= control target key end

     0   :  { %vm45_vm0 = vcmask 261120   ;;  %v530_v2 = vmov 0.0   ;;  %vm531_vm1 = vmmov 0   ;;  %s701_s0 = inlined_call_operand.vmem [shape: f32[1,32], index: 0, kind: input, shape index: {}]   ;;  %s702_s1 = inlined_call_operand.vmem [shape: f32[16,32], index: 1, kind: input, shape index: {}]   ;;  %s703_s2 = inlined_call_operand.vmem [shape: f32[128,32], index: 2, kind: input, shape index: {}]   ;;  %s704_s3 = inlined_call_operand.hbm [shape: f32[16,128], index: 3, kind: output, shape index: {}]  }
   0x1   :  { %v36_v0 = vld [vmem:[%s703_s2 + $0x78] sm:$0xff]  ;;  %v35_v1 = vld [vmem:[%s703_s2 + $0x70] sm:$0xff]  ;;  %462 = vmatprep.subr.mxu1 %v530_v2  ;;  %494 = vmatprep.mubr.msk.f32.mxu1 %vm531_vm1, %v530_v2  ;;  %v34_v5 = vld [vmem:[%s703_s2 + $0x68] sm:$0xff] }
   0x2   :  { %427 = vmatprep.subr.msk.mxu0 %vm45_vm0, %v36_v0  ;;  %v200_v3 = vmul.f32 %v36_v0, %v36_v0  ;;  %v199_v4 = vmul.f32 %v35_v1, %v35_v1  ;;  %v15_v6 = vld [vmem:[%s701_s0] sm:$0x1] }
   0x3   :  { %428 = vmatpush3.xpose.msk.msra.mxu0 %vm45_vm0, %v36_v0  ;;  %v16_v7 = vsub.f32 0.0, %v15_v6 }
   0x4   :  { %463 = vmatpush3.xpose.msk.msra.mxu1 %vm45_vm0, %v200_v3  ;;  %429 = vmatprep.subr.msk.mxu0 %vm45_vm0, %v35_v1 }
   0x5   :  { %464 = vmatprep.subr.mxu1 %v530_v2 }
   0x7   :  { %430 = vmatpush3.xpose.msk.msra.mxu0 %vm45_vm0, %v35_v1 }
   0x8   :  { %8 = vsyncpa [#allocation3], 0  ;;  %465 = vmatpush3.xpose.msk.msra.mxu1 %vm45_vm0, %v199_v4  ;;  %431 = vmatprep.subr.msk.mxu0 %vm45_vm0, %v34_v5  ;;  %v198_v8 = vmul.f32 %v34_v5, %v34_v5  ;;  %v33_v9 = vld [vmem:[%s703_s2 + $0x60] sm:$0xff]  ;;  %v17_v10 = vmul.f32 1.442695, %v16_v7  ;;  %v32_v12 = vld [vmem:[%s703_s2 + $0x58] sm:$0xff]  ;;  %v38_v13 = vlaneseq }
   0x9   :  { %466 = vmatprep.subr.mxu1 %v530_v2  ;;  %v197_v11 = vmul.f32 %v33_v9, %v33_v9  ;;  %v196_v14 = vmul.f32 %v32_v12, %v32_v12  ;;  %v31_v15 = vld [vmem:[%s703_s2 + $0x50] sm:$0xff]  ;;  %v30_v18 = vld [vmem:[%s703_s2 + $0x48] sm:$0xff]  ;;  %v19_v20 = vld [vmem:[%s702_s1] sm:$0xff] }
   0xa   :  { %502 = vpow2.f32 %v17_v10  ;;  %v595_v16 = vshrl.u32 %v38_v13, 7  ;;  %v195_v17 = vmul.f32 %v31_v15, %v31_v15  ;;  %v611_v21 = vld [vmem:[%s702_s1 + $0x8] sm:$0xff]  ;;  %v175_v22 = vmul.f32 %v19_v20, %v19_v20  ;;  %v29_v26 = vld [vmem:[%s703_s2 + $0x40] sm:$0xff]  ;;  %v28_v32 = vld [vmem:[%s703_s2 + $0x38] sm:$0xff] }
   0xb   :  { %432 = vmatpush3.xpose.msk.msra.mxu0 %vm45_vm0, %v34_v5  ;;  %v176_v23 = vmul.f32 %v611_v21, %v611_v21  ;;  %v194_v25 = vmul.f32 %v30_v18, %v30_v18  ;;  %v193_v31 = vmul.f32 %v29_v26, %v29_v26  ;;  %v192_v35 = vmul.f32 %v28_v32, %v28_v32  ;;  %v27_v36 = vld [vmem:[%s703_s2 + $0x30] sm:$0xff]  ;;  %v26_v38 = vld [vmem:[%s703_s2 + $0x28] sm:$0xff]  ;;  %v25_v40 = vld [vmem:[%s703_s2 + $0x20] sm:$0xff] }
   0xc   :  { %467 = vmatpush3.xpose.msk.msra.mxu1 %vm45_vm0, %v198_v8  ;;  %433 = vmatprep.subr.msk.mxu0 %vm45_vm0, %v33_v9  ;;  %v40_v19 = vsub.s32 0, %v595_v16  ;;  %v191_v37 = vmul.f32 %v27_v36, %v27_v36  ;;  %v190_v39 = vmul.f32 %v26_v38, %v26_v38  ;;  %v189_v41 = vmul.f32 %v25_v40, %v25_v40  ;;  %v24_v42 = vld [vmem:[%s703_s2 + $0x18] sm:$0xff]  ;;  %v23_v44 = vld [vmem:[%s703_s2 + $0x10] sm:$0xff]  ;;  %v22_v46 = vld [vmem:[%s703_s2 + $0x8] sm:$0xff] }
   0xd   :  { %468 = vmatprep.subr.mxu1 %v530_v2  ;;  %v188_v43 = vmul.f32 %v24_v42, %v24_v42  ;;  %v187_v45 = vmul.f32 %v23_v44, %v23_v44  ;;  %v186_v47 = vmul.f32 %v22_v46, %v22_v46  ;;  %v21_v48 = vld [vmem:[%s703_s2] sm:$0xff]  ;;  %s532_s2 = smov [#allocation2]  }
   0xe   :  { %v185_v49 = vmul.f32 %v21_v48, %v21_v48  ;;  %s346_s21 = sshll.u32 %s532_s2, 4  ;;  %s347_s21 = int_to_ptr.vmem [resolvable:$true] %s346_s21 }
   0xf   :  { %434 = vmatpush3.xpose.msk.msra.mxu0 %vm45_vm0, %v33_v9  ;;  %s508_s0 = scalar_lea.vmem %s347_s21, 256  ;;  %p513_p1 = scmp.lt.s32.totalorder %s347_s21, %s347_s21 }
  0x10   :  { %469 = vmatpush3.xpose.msk.msra.mxu1 %vm45_vm0, %v197_v11  ;;  %435 = vmatprep.subr.msk.mxu0 %vm45_vm0, %v32_v12  ;;  %p509_p0 = scmp.ne.s32.totalorder %s347_s21, %s508_s0  ;;  %p514_p2 = scmp.lt.s32.totalorder %s508_s0, %s508_s0 }
  0x11   :  { %470 = vmatprep.subr.mxu1 %v530_v2 }
  0x12   :  { %p515_p3 = por %p514_p2, %p513_p1 }
  0x13   :  { %436 = vmatpush3.xpose.msk.msra.mxu0 %vm45_vm0, %v32_v12 }
  0x14   :  { %471 = vmatpush3.xpose.msk.msra.mxu1 %vm45_vm0, %v196_v14  ;;  %437 = vmatprep.subr.msk.mxu0 %vm45_vm0, %v31_v15  ;;  %p516_p4 = pnand %p515_p3, %p509_p0 }
  0x15   :  { %472 = vmatprep.subr.mxu1 %v530_v2 }
  0x17   :  { %438 = vmatpush3.xpose.msk.msra.mxu0 %vm45_vm0, %v31_v15  ;;  %v616_v24 = vpop.eup %502 }
  0x18   :  { %473 = vmatpush3.xpose.msk.msra.mxu1 %vm45_vm0, %v195_v17  ;;  %439 = vmatprep.subr.msk.mxu0 %vm45_vm0, %v30_v18  ;;  %v41_v27 = vrot.slane %v616_v24, %v40_v19 }
  0x19   :  { %474 = vmatprep.subr.mxu1 %v530_v2 }
  0x1a   :  { %v43_v28 = vmul.f32 %v41_v27, %v19_v20  ;;  %v177_v29 = vmul.f32 %v175_v22, %v41_v27  ;;  %v178_v30 = vmul.f32 %v176_v23, %v41_v27  ;;  %v44_v50 = vmul.f32 %v41_v27, %v611_v21 }
  0x1b   :  { %440 = vmatpush3.xpose.msk.msra.mxu0 %vm45_vm0, %v30_v18 }
  0x1c   :  { %475 = vmatpush3.xpose.msk.msra.mxu1 %vm45_vm0, %v194_v25  ;;  %441 = vmatprep.subr.msk.mxu0 %vm45_vm0, %v29_v26  ;;  %v179_v33 = vsel %vm45_vm0, %v177_v29, 0.0  ;;  %v182_v34 = vsel %vm45_vm0, %v178_v30, 0.0 }
  0x1d   :  { %476 = vmatprep.subr.mxu1 %v530_v2  ;;  %459 = vmatprep.mubr.msk.f32.mxu0 %vm45_vm0, %v43_v28 }
  0x1e   :  { %180 = vadd.xlane.f32.xlu0 %v179_v33 }
  0x1f   :  { %442 = vmatpush3.xpose.msk.msra.mxu0 %vm45_vm0, %v29_v26 }
  0x20   :  { %477 = vmatpush3.xpose.msk.msra.mxu1 %vm45_vm0, %v193_v31  ;;  %443 = vmatprep.subr.msk.mxu0 %vm45_vm0, %v28_v32 }
  0x21   :  { %478 = vmatprep.subr.mxu1 %v530_v2 }
  0x22   :  { %183 = vadd.xlane.f32.xlu0 %v182_v34 }
  0x23   :  { %444 = vmatpush3.xpose.msk.msra.mxu0 %vm45_vm0, %v28_v32 }
  0x24   :  { %479 = vmatpush3.xpose.msk.msra.mxu1 %vm45_vm0, %v192_v35  ;;  %445 = vmatprep.subr.msk.mxu0 %vm45_vm0, %v27_v36 }
  0x25   :  { %480 = vmatprep.subr.mxu1 %v530_v2 }
  0x27   :  { %446 = vmatpush3.xpose.msk.msra.mxu0 %vm45_vm0, %v27_v36 }
  0x28   :  { %481 = vmatpush3.xpose.msk.msra.mxu1 %vm45_vm0, %v191_v37  ;;  %447 = vmatprep.subr.msk.mxu0 %vm45_vm0, %v26_v38 }
  0x29   :  { %482 = vmatprep.subr.mxu1 %v530_v2 }
  0x2b   :  { %448 = vmatpush3.xpose.msk.msra.mxu0 %vm45_vm0, %v26_v38 }
  0x2c   :  { %483 = vmatpush3.xpose.msk.msra.mxu1 %vm45_vm0, %v190_v39  ;;  %449 = vmatprep.subr.msk.mxu0 %vm45_vm0, %v25_v40 }
  0x2d   :  { %484 = vmatprep.subr.mxu1 %v530_v2 }
  0x2f   :  { %450 = vmatpush3.xpose.msk.msra.mxu0 %vm45_vm0, %v25_v40 }
  0x30   :  { %485 = vmatpush3.xpose.msk.msra.mxu1 %vm45_vm0, %v189_v41  ;;  %451 = vmatprep.subr.msk.mxu0 %vm45_vm0, %v24_v42 }
  0x31   :  { %486 = vmatprep.subr.mxu1 %v530_v2 }
  0x33   :  { %452 = vmatpush3.xpose.msk.msra.mxu0 %vm45_vm0, %v24_v42 }
  0x34   :  { %487 = vmatpush3.xpose.msk.msra.mxu1 %vm45_vm0, %v188_v43  ;;  %453 = vmatprep.subr.msk.mxu0 %vm45_vm0, %v23_v44 }
  0x35   :  { %488 = vmatprep.subr.mxu1 %v530_v2 }
  0x37   :  { %454 = vmatpush3.xpose.msk.msra.mxu0 %vm45_vm0, %v23_v44 }
  0x38   :  { %489 = vmatpush3.xpose.msk.msra.mxu1 %vm45_vm0, %v187_v45  ;;  %455 = vmatprep.subr.msk.mxu0 %vm45_vm0, %v22_v46 }
  0x39   :  { %490 = vmatprep.subr.mxu1 %v530_v2 }
  0x3b   :  { %456 = vmatpush3.xpose.msk.msra.mxu0 %vm45_vm0, %v22_v46 }
  0x3c   :  { %491 = vmatpush3.xpose.msk.msra.mxu1 %vm45_vm0, %v186_v47  ;;  %457 = vmatprep.subr.msk.mxu0 %vm45_vm0, %v21_v48 }
  0x3d   :  { %492 = vmatprep.subr.mxu1 %v530_v2 }
  0x3f   :  { %458 = vmatpush3.xpose.msk.msra.mxu0 %vm45_vm0, %v21_v48 }
  0x40   :  { %493 = vmatpush3.xpose.msk.msra.mxu1 %vm45_vm0, %v185_v49 }
  0x42   :  { %460 = vmatmul.mubr.msk.f32.vlgmr.msra.gmra.mxu0 %vm45_vm0, %v44_v50 }
  0x43   :  { %495 = vmatmul.mubr.msk.f32.vlgmr.msra.gmra.mxu1 %vm45_vm0, %v616_v24 }
  0xa7   :  { %v181_v51 = vpop.xlane.xlu0 %180 }
  0xab   :  { %v184_v54 = vpop.xlane.xlu0 %183 }
 0x102   :  { %v461_v52 = vpop.f32.mrf.mxu0 }
 0x103   :  { %v317_v53 = vpop.f32.mrf.mxu1  ;;  %v328_v59 = vmul.f32 2.0, %v461_v52 }
 0x104   :  { %v324_v55 = vrot.slane %v317_v53, %v40_v19  ;;  %v166_v56 = vpop.f32.mrf.mxu0 }
 0x105   :  { %v327_v57 = vmul.f32 2.0, %v166_v56  ;;  %v496_v58 = vpop.f32.mrf.mxu1 }
 0x106   :  { %v325_v60 = vadd.f32 %v324_v55, %v181_v51  ;;  %v326_v61 = vadd.f32 %v324_v55, %v184_v54 }
 0x108   :  { %v329_v62 = vsub.f32 %v325_v60, %v327_v57  ;;  %v330_v63 = vsub.f32 %v326_v61, %v328_v59 }
 0x10a   :  { %v331_v0 = vmax.f32 %v329_v62, 0.0  ;;  %v332_v1 = vmax.f32 %v330_v63, 0.0 }
 0x10c   :  { %v333_v2 = vmul.f32 -0.5, %v331_v0  ;;  %v334_v3 = vmul.f32 -0.5, %v332_v1 }
 0x10e   :  { %v335_v4 = vmul.f32 1.442695, %v333_v2  ;;  %v337_v5 = vmul.f32 1.442695, %v334_v3 }
 0x110   :  { %504 = vpow2.f32 %v335_v4 }
 0x111   :  { %506 = vpow2.f32 %v337_v5 }
 0x11d   :  { %v505_v6 = vpop.eup %504 }
 0x11e   :  { %v507_v7 = vpop.eup %506  ;;  %339 = vst [vmem:[#allocation2] sm:$0xff] %v505_v6 }
 0x11f   :  { %340 = vst [vmem:[#allocation2 + $0x8] sm:$0xff] %v507_v7 }
 0x120   :  { %519 = shalt.err (!%p516_p4)
}
 0x121   :  { %s533_s22 = smov 128   ;;  %s534_s23 = smov 8  }
 0x122   :  { %352 = dma.vmem_to_hbm [thread:$0]  %s347_s21, 256, %s704_s3, [#allocation3], %s533_s22, %s533_s22, %s534_s23  }
 0x123   :  { %528 = dma.done.wait [#allocation3], 256  }
 0x124   :  { %529 = vsyncadd [#allocation3], 4294967040 }
 0x125   :  { %356 = vsyncpa [#allocation3], 1 }

</bundles_post_ra>
